<compile_context>
chip_gen: v6e
topology: v6e:2x2x1
jax: 0.10.0
libtpu: 0.0.40
codegen_flags: <defaults>
</compile_context>

<pallas_src>
import math
import jax
import jax.numpy as jnp
from jax import lax
from jax.experimental import pallas as pl
from jax.experimental.pallas import tpu as pltpu

LN_EPS = 1e-5
INV_SQRT2 = 1.0 / math.sqrt(2.0)


# --------------------------------------------------------------------------
# In-kernel math helpers (traced inside the kernels, all f32 elementwise).
# --------------------------------------------------------------------------
def _layernorm_f32(x, gamma, beta):
    xf = x.astype(jnp.float32)
    mean = jnp.mean(xf, axis=-1, keepdims=True)
    centered = xf - mean
    var = jnp.mean(centered * centered, axis=-1, keepdims=True)
    xn = centered * lax.rsqrt(var + LN_EPS)
    return xn * gamma.astype(jnp.float32) + beta.astype(jnp.float32)


def _gelu_exact_f32(h):
    # PyTorch default GELU (erf form). TODO(synk): optional tanh approximation
    # (EUP slot) would co-issue with the MXU on v6e but changes numerics.
    return 0.5 * h * (1.0 + lax.erf(h * INV_SQRT2))


# --------------------------------------------------------------------------
# Fast path: full bf16 weights resident in VMEM, 1-D grid over row tiles.
# --------------------------------------------------------------------------
def ffn_resident_kernel(x_ref, g_ref, beta_ref, w1_ref, b1_ref, w2_ref, b2_ref,
                        o_ref):
    xn = _layernorm_f32(x_ref[...], g_ref[...], beta_ref[...])
    h = jnp.dot(xn.astype(w1_ref.dtype), w1_ref[...],
                preferred_element_type=jnp.float32)
    h = _gelu_exact_f32(h + b1_ref[...].astype(jnp.float32))
    out = jnp.dot(h.astype(w2_ref.dtype), w2_ref[...],
                  preferred_element_type=jnp.float32)
    o_ref[...] = out + b2_ref[...].astype(jnp.float32)


# --------------------------------------------------------------------------
# Streaming path: 2-D grid (row tiles, hidden tiles). The f32 output block is
# the accumulator (its index_map ignores j). LayerNorm is computed once per
# row tile (j == 0) and cached in bf16 scratch.
# --------------------------------------------------------------------------
def ffn_streaming_kernel(x_ref, g_ref, beta_ref, w1_ref, b1_ref, w2_ref,
                         b2_ref, o_ref, xn_ref):
    j = pl.program_id(1)

    @pl.when(j == 0)
    def _():
        xn = _layernorm_f32(x_ref[...], g_ref[...], beta_ref[...])
        xn_ref[...] = xn.astype(xn_ref.dtype)
        # Initialize the output accumulator with the output bias: no epilogue.
        o_ref[...] = jnp.broadcast_to(b2_ref[...].astype(o_ref.dtype),
                                      o_ref.shape)

    h = jnp.dot(xn_ref[...], w1_ref[...], preferred_element_type=jnp.float32)
    h = _gelu_exact_f32(h + b1_ref[...].astype(jnp.float32))
    o_ref[...] += jnp.dot(h.astype(w2_ref.dtype), w2_ref[...],
                          preferred_element_type=jnp.float32)


# --------------------------------------------------------------------------
# Sizing helpers.
# --------------------------------------------------------------------------
def _round_up(v, m):
    return ((v + m - 1) // m) * m


def _vmem_budget():
    cap = 64 * 1024 * 1024  # conservative fallback valid on every generation
    try:
        info = pltpu.get_tpu_info()
        cap = int(getattr(info, "vmem_capacity_bytes", cap))
    except Exception:
        pass
    return (cap * 3) // 4  # leave ~25% headroom for compiler scratch


def _resident_footprint(tm, dim, hidden, x_bytes):
    return (2 * tm * dim * x_bytes            # x row tiles (double-buffered)
            + 2 * tm * dim * 4                # f32 output row tiles
            + 2 * dim * hidden * 2            # w1 bf16 (pipeline keeps 2 bufs)
            + 2 * hidden * dim * 2            # w2 bf16
            + 2 * (3 * dim + hidden) * 4      # gamma / beta / b1 / b2
            + 2 * tm * hidden * 4             # (tm, hidden) f32 temporaries
            + (4 << 20))                      # compiler scratch headroom


def _streaming_footprint(tm, th, dim, x_bytes):
    return (2 * tm * dim * x_bytes            # x row tiles
            + 2 * tm * dim * 4                # f32 output (= accumulator) tiles
            + 2 * dim * th * 2                # streamed w1 tiles (bf16)
            + 2 * th * dim * 2                # streamed w2 tiles (bf16)
            + 2 * (3 * dim + th) * 4          # gamma / beta / b1 / b2 tiles
            + tm * dim * 2                    # cached LayerNorm(x) (bf16)
            + 2 * tm * th * 4                 # (tm, th) f32 temporaries
            + (4 << 20))                      # compiler scratch headroom


# --------------------------------------------------------------------------
# Wrapper.
# --------------------------------------------------------------------------
def feedforward(x, params, *, tm=512, th=1024, compute_dtype=jnp.bfloat16,
                path="auto"):
    """x: (batch, seq, dim). params: gamma/beta/w1/b1/w2/b2, weights (in, out).

    path: "auto" | "resident" | "streaming".
    """
    batch, seq, dim = x.shape
    hidden = params["w1"].shape[1]
    rows = batch * seq
    x_bytes = jnp.dtype(x.dtype).itemsize
    budget = _vmem_budget()

    # ---- row tile: above the HBM balance point, clamped to the row count, ----
    # ---- and split so v7x's second TensorCore gets work for larger inputs ----
    tm = max(8, _round_up(int(tm), 8))
    tm = min(tm, _round_up(rows, 8))
    if rows >= 256 and -(-rows // tm) < 2:
        tm = _round_up(-(-rows // 2), 8)

    # ---- pad hidden to a 128 multiple so every hidden tile is well-shaped ----
    hidden_p = _round_up(hidden, 128)

    # ---- bf16 weights for the MXU; LN params / biases stay f32 ----
    w1 = params["w1"].astype(compute_dtype)
    w2 = params["w2"].astype(compute_dtype)
    b1 = params["b1"].astype(jnp.float32)
    if hidden_p != hidden:
        w1 = jnp.pad(w1, ((0, 0), (0, hidden_p - hidden)))
        b1 = jnp.pad(b1, ((0, hidden_p - hidden),))
        w2 = jnp.pad(w2, ((0, hidden_p - hidden), (0, 0)))
    b1 = b1.reshape(1, hidden_p)
    gamma = params["gamma"].reshape(1, dim).astype(jnp.float32)
    beta = params["beta"].reshape(1, dim).astype(jnp.float32)
    b2 = params["b2"].reshape(1, dim).astype(jnp.float32)

    # ---- choose path ----
    if path == "auto":
        use_resident = _resident_footprint(tm, dim, hidden_p, x_bytes) <= budget
    else:
        use_resident = (path == "resident")

    th_eff = None
    if not use_resident:
        # Largest 128-multiple divisor of hidden_p that is <= requested th AND
        # fits the VMEM budget; shrink tm if even th=128 does not fit.
        th = max(128, int(th))
        th_divs = [d for d in range(128, hidden_p + 1, 128) if hidden_p % d == 0]
        th_divs.sort(reverse=True)
        while th_eff is None:
            for d in th_divs:
                if d <= th and _streaming_footprint(tm, d, dim, x_bytes) <= budget:
                    th_eff = d
                    break
            if th_eff is None:
                if tm <= 64:
                    th_eff = 128  # last resort; let the compiler try
                else:
                    tm = max(64, _round_up(tm // 2, 8))

    # ---- pad rows so the grid divides evenly (padded rows sliced off) ----
    rows_p = _round_up(rows, tm)
    x2d = x.reshape(rows, dim)
    if rows_p != rows:
        x2d = jnp.pad(x2d, ((0, rows_p - rows), (0, 0)))

    if use_resident:
        out2d = pl.pallas_call(
            ffn_resident_kernel,
            out_shape=jax.ShapeDtypeStruct((rows_p, dim), jnp.float32),
            grid_spec=pltpu.PrefetchScalarGridSpec(
                num_scalar_prefetch=0,
                grid=(rows_p // tm,),
                in_specs=[
                    pl.BlockSpec((tm, dim), lambda i: (i, 0)),        # x rows
                    pl.BlockSpec((1, dim), lambda i: (0, 0)),         # gamma
                    pl.BlockSpec((1, dim), lambda i: (0, 0)),         # beta
                    pl.BlockSpec((dim, hidden_p), lambda i: (0, 0)),  # w1 full
                    pl.BlockSpec((1, hidden_p), lambda i: (0, 0)),    # b1 full
                    pl.BlockSpec((hidden_p, dim), lambda i: (0, 0)),  # w2 full
                    pl.BlockSpec((1, dim), lambda i: (0, 0)),         # b2
                ],
                out_specs=pl.BlockSpec((tm, dim), lambda i: (i, 0)),
            ),
            compiler_params=pltpu.CompilerParams(
                dimension_semantics=("parallel",),
                vmem_limit_bytes=budget),
        )(x2d, gamma, beta, w1, b1, w2, b2)
    else:
        out2d = pl.pallas_call(
            ffn_streaming_kernel,
            out_shape=jax.ShapeDtypeStruct((rows_p, dim), jnp.float32),
            grid_spec=pltpu.PrefetchScalarGridSpec(
                num_scalar_prefetch=0,
                grid=(rows_p // tm, hidden_p // th_eff),
                in_specs=[
                    pl.BlockSpec((tm, dim), lambda i, j: (i, 0)),     # x rows
                    pl.BlockSpec((1, dim), lambda i, j: (0, 0)),      # gamma
                    pl.BlockSpec((1, dim), lambda i, j: (0, 0)),      # beta
                    pl.BlockSpec((dim, th_eff), lambda i, j: (0, j)),  # w1 tile
                    pl.BlockSpec((1, th_eff), lambda i, j: (0, j)),    # b1 tile
                    pl.BlockSpec((th_eff, dim), lambda i, j: (j, 0)),  # w2 tile
                    pl.BlockSpec((1, dim), lambda i, j: (0, 0)),      # b2
                ],
                out_specs=pl.BlockSpec((tm, dim), lambda i, j: (i, 0)),
                scratch_shapes=[
                    pltpu.VMEM((tm, dim), compute_dtype),  # cached LayerNorm(x)
                ],
            ),
            compiler_params=pltpu.CompilerParams(
                dimension_semantics=("parallel", "arbitrary"),
                vmem_limit_bytes=budget),
        )(x2d, gamma, beta, w1, b1, w2, b2)

    return out2d[:rows].reshape(batch, seq, dim).astype(x.dtype)


# --------------------------------------------------------------------------
# Deterministic synthetic params matching the PyTorch module's shapes/init.
# --------------------------------------------------------------------------
def init_params(key, dim, hidden):
    k1, k2, k3, k4 = jax.random.split(key, 4)
    gamma = jnp.ones((dim,), jnp.float32)          # LayerNorm default init
    beta = jnp.zeros((dim,), jnp.float32)
    bound1 = 1.0 / math.sqrt(dim)
    w1 = jax.random.uniform(k1, (dim, hidden), jnp.float32, -bound1, bound1)
    b1 = jax.random.uniform(k2, (hidden,), jnp.float32, -bound1, bound1)
    bound2 = 1.0 / math.sqrt(hidden)
    w2 = jax.random.uniform(k3, (hidden, dim), jnp.float32, -bound2, bound2)
    b2 = jax.random.uniform(k4, (dim,), jnp.float32, -bound2, bound2)
    return dict(gamma=gamma, beta=beta, w1=w1, b1=b1, w2=w2, b2=b2)


def feedforward_ref(x, p, compute_dtype=jnp.bfloat16):
    """Pure-JAX reference mimicking the kernel's bf16-in / f32-acc matmuls."""
    xf = x.astype(jnp.float32)
    mean = jnp.mean(xf, axis=-1, keepdims=True)
    var = jnp.mean((xf - mean) ** 2, axis=-1, keepdims=True)
    xn = (xf - mean) * lax.rsqrt(var + LN_EPS) * p["gamma"] + p["beta"]
    h = jnp.dot(xn.astype(compute_dtype), p["w1"].astype(compute_dtype),
                preferred_element_type=jnp.float32) + p["b1"]
    h = 0.5 * h * (1.0 + lax.erf(h * INV_SQRT2))
    out = jnp.dot(h.astype(compute_dtype), p["w2"].astype(compute_dtype),
                  preferred_element_type=jnp.float32) + p["b2"]
    return out.astype(x.dtype)


if __name__ == "__main__":
    # Small but structurally interesting: rows=18 exercises row padding;
    # the forced streaming run with th=128 exercises the hidden-axis
    # accumulate-into-output loop (2 j-steps).
    batch, seq, dim, hidden = 2, 9, 128, 256
    key = jax.random.PRNGKey(0)
    kx, kp = jax.random.split(key)
    x = jax.random.normal(kx, (batch, seq, dim), jnp.float32)
    params = init_params(kp, dim, hidden)

    ref = feedforward_ref(x, params)

    # Auto path (weights-resident fast path at this size).
    out_fast = jax.block_until_ready(feedforward(x, params))
    assert out_fast.shape == (batch, seq, dim)
    err_fast = float(jnp.max(jnp.abs(out_fast - ref)))
    assert jnp.allclose(out_fast, ref, atol=1e-2, rtol=1e-2), err_fast

    # Forced streaming path (hidden tiled, output-block accumulation).
    out_stream = jax.block_until_ready(
        feedforward(x, params, th=128, path="streaming"))
    err_stream = float(jnp.max(jnp.abs(out_stream - ref)))
    assert jnp.allclose(out_stream, ref, atol=1e-2, rtol=1e-2), err_stream

    print("KERNEL_OK")
</pallas_src>

<mosaic_0001>
module attributes {stable_mosaic.version = 11 : i64} {
  func.func @ffn_resident_kernel(%arg0: i32, %arg1: memref<24x128xf32, #tpu.memory_space<vmem>>, %arg2: memref<1x128xf32, #tpu.memory_space<vmem>>, %arg3: memref<1x128xf32, #tpu.memory_space<vmem>>, %arg4: memref<128x256xbf16, #tpu.memory_space<vmem>>, %arg5: memref<1x256xf32, #tpu.memory_space<vmem>>, %arg6: memref<256x128xbf16, #tpu.memory_space<vmem>>, %arg7: memref<1x128xf32, #tpu.memory_space<vmem>>, %arg8: memref<24x128xf32, #tpu.memory_space<vmem>>) attributes {dimension_semantics = [#tpu.dimension_semantics<parallel>], iteration_bounds = array<i64: 1>, scalar_prefetch = 0 : i64, scratch_operands = 0 : i64, tpu.core_type = #tpu.core_type<tc>, window_params = [{transform_indices = @transform_0, window_bounds = array<i64: 24, 128>}, {pipeline_mode = #tpu.pipeline_mode<synchronous>, transform_indices = @transform_1, window_bounds = array<i64: 1, 128>}, {pipeline_mode = #tpu.pipeline_mode<synchronous>, transform_indices = @transform_2, window_bounds = array<i64: 1, 128>}, {pipeline_mode = #tpu.pipeline_mode<synchronous>, transform_indices = @transform_3, window_bounds = array<i64: 128, 256>}, {pipeline_mode = #tpu.pipeline_mode<synchronous>, transform_indices = @transform_4, window_bounds = array<i64: 1, 256>}, {pipeline_mode = #tpu.pipeline_mode<synchronous>, transform_indices = @transform_5, window_bounds = array<i64: 256, 128>}, {pipeline_mode = #tpu.pipeline_mode<synchronous>, transform_indices = @transform_6, window_bounds = array<i64: 1, 128>}, {transform_indices = @transform_7, window_bounds = array<i64: 24, 128>}]} {
    %c0 = arith.constant 0 : index
    %c0_0 = arith.constant 0 : index
    %0 = vector.load %arg1[%c0, %c0_0] : memref<24x128xf32, #tpu.memory_space<vmem>>, vector<24x128xf32>
    %c0_1 = arith.constant 0 : index
    %c0_2 = arith.constant 0 : index
    %1 = vector.load %arg2[%c0_1, %c0_2] : memref<1x128xf32, #tpu.memory_space<vmem>>, vector<1x128xf32>
    %c0_3 = arith.constant 0 : index
    %c0_4 = arith.constant 0 : index
    %2 = vector.load %arg3[%c0_3, %c0_4] : memref<1x128xf32, #tpu.memory_space<vmem>>, vector<1x128xf32>
    %cst = arith.constant dense<0.000000e+00> : vector<24xf32>
    %3 = vector.multi_reduction <add>, %0, %cst [1] : vector<24x128xf32> to vector<24xf32>
    %4 = vector.shape_cast %3 : vector<24xf32> to vector<24x1xf32>
    %cst_5 = arith.constant 1.280000e+02 : f32
    %5 = vector.broadcast %cst_5 : f32 to vector<24x1xf32>
    %6 = arith.divf %4, %5 : vector<24x1xf32>
    %7 = vector.broadcast %6 : vector<24x1xf32> to vector<24x128xf32>
    %8 = arith.subf %0, %7 : vector<24x128xf32>
    %9 = arith.mulf %8, %8 : vector<24x128xf32>
    %cst_6 = arith.constant dense<0.000000e+00> : vector<24xf32>
    %10 = vector.multi_reduction <add>, %9, %cst_6 [1] : vector<24x128xf32> to vector<24xf32>
    %11 = vector.shape_cast %10 : vector<24xf32> to vector<24x1xf32>
    %cst_7 = arith.constant 1.280000e+02 : f32
    %12 = vector.broadcast %cst_7 : f32 to vector<24x1xf32>
    %13 = arith.divf %11, %12 : vector<24x1xf32>
    %cst_8 = arith.constant 9.99999974E-6 : f32
    %14 = vector.broadcast %cst_8 : f32 to vector<24x1xf32>
    %15 = arith.addf %13, %14 : vector<24x1xf32>
    %16 = math.rsqrt %15 : vector<24x1xf32>
    %17 = vector.broadcast %16 : vector<24x1xf32> to vector<24x128xf32>
    %18 = arith.mulf %8, %17 : vector<24x128xf32>
    %19 = vector.broadcast %1 : vector<1x128xf32> to vector<24x128xf32>
    %20 = arith.mulf %18, %19 : vector<24x128xf32>
    %21 = vector.broadcast %2 : vector<1x128xf32> to vector<24x128xf32>
    %22 = arith.addf %20, %21 : vector<24x128xf32>
    %23 = arith.truncf %22 : vector<24x128xf32> to vector<24x128xbf16>
    %c0_9 = arith.constant 0 : index
    %c0_10 = arith.constant 0 : index
    %24 = vector.load %arg4[%c0_9, %c0_10] : memref<128x256xbf16, #tpu.memory_space<vmem>>, vector<128x256xbf16>
    %cst_11 = arith.constant dense<0.000000e+00> : vector<24x256xf32>
    %25 = tpu.matmul %23, %24, %cst_11 {dimension_numbers = #tpu.dot_dimension_numbers<[1], [0], [0], [1], [0, 0, 1, 1], [], []>} : vector<24x128xbf16>, vector<128x256xbf16>, vector<24x256xf32> -> vector<24x256xf32>
    %c0_12 = arith.constant 0 : index
    %c0_13 = arith.constant 0 : index
    %26 = vector.load %arg5[%c0_12, %c0_13] : memref<1x256xf32, #tpu.memory_space<vmem>>, vector<1x256xf32>
    %27 = vector.broadcast %26 : vector<1x256xf32> to vector<24x256xf32>
    %28 = arith.addf %25, %27 : vector<24x256xf32>
    %cst_14 = arith.constant 5.000000e-01 : f32
    %29 = vector.broadcast %cst_14 : f32 to vector<24x256xf32>
    %30 = arith.mulf %29, %28 : vector<24x256xf32>
    %cst_15 = arith.constant 0.707106769 : f32
    %31 = vector.broadcast %cst_15 : f32 to vector<24x256xf32>
    %32 = arith.mulf %28, %31 : vector<24x256xf32>
    %33 = math.erf %32 : vector<24x256xf32>
    %cst_16 = arith.constant 1.000000e+00 : f32
    %34 = vector.broadcast %cst_16 : f32 to vector<24x256xf32>
    %35 = arith.addf %34, %33 : vector<24x256xf32>
    %36 = arith.mulf %30, %35 : vector<24x256xf32>
    %37 = arith.truncf %36 : vector<24x256xf32> to vector<24x256xbf16>
    %c0_17 = arith.constant 0 : index
    %c0_18 = arith.constant 0 : index
    %38 = vector.load %arg6[%c0_17, %c0_18] : memref<256x128xbf16, #tpu.memory_space<vmem>>, vector<256x128xbf16>
    %cst_19 = arith.constant dense<0.000000e+00> : vector<24x128xf32>
    %39 = tpu.matmul %37, %38, %cst_19 {dimension_numbers = #tpu.dot_dimension_numbers<[1], [0], [0], [1], [0, 0, 1, 1], [], []>} : vector<24x256xbf16>, vector<256x128xbf16>, vector<24x128xf32> -> vector<24x128xf32>
    %c0_20 = arith.constant 0 : index
    %c0_21 = arith.constant 0 : index
    %40 = vector.load %arg7[%c0_20, %c0_21] : memref<1x128xf32, #tpu.memory_space<vmem>>, vector<1x128xf32>
    %41 = vector.broadcast %40 : vector<1x128xf32> to vector<24x128xf32>
    %42 = arith.addf %39, %41 : vector<24x128xf32>
    %c0_22 = arith.constant 0 : index
    %c0_23 = arith.constant 0 : index
    %43 = vector.load %arg8[%c0_22, %c0_23] : memref<24x128xf32, #tpu.memory_space<vmem>>, vector<24x128xf32>
    tpu.vector_store %arg8[%c0_22, %c0_23], %42 {strides = array<i32>} : memref<24x128xf32, #tpu.memory_space<vmem>>, vector<24x128xf32>,
    return
  }
  func.func @transform_0(%arg0: i32) -> (i32, i32) {
    %c0_i32 = arith.constant 0 : i32
    %c0_i32_0 = arith.constant 0 : i32
    return %arg0, %c0_i32 : i32, i32
  }
  func.func @transform_1(%arg0: i32) -> (i32, i32) {
    %c0_i32 = arith.constant 0 : i32
    %c0_i32_0 = arith.constant 0 : i32
    %c0_i32_1 = arith.constant 0 : i32
    return %c0_i32, %c0_i32_0 : i32, i32
  }
  func.func @transform_2(%arg0: i32) -> (i32, i32) {
    %c0_i32 = arith.constant 0 : i32
    %c0_i32_0 = arith.constant 0 : i32
    %c0_i32_1 = arith.constant 0 : i32
    return %c0_i32, %c0_i32_0 : i32, i32
  }
  func.func @transform_3(%arg0: i32) -> (i32, i32) {
    %c0_i32 = arith.constant 0 : i32
    %c0_i32_0 = arith.constant 0 : i32
    %c0_i32_1 = arith.constant 0 : i32
    return %c0_i32, %c0_i32_0 : i32, i32
  }
  func.func @transform_4(%arg0: i32) -> (i32, i32) {
    %c0_i32 = arith.constant 0 : i32
    %c0_i32_0 = arith.constant 0 : i32
    %c0_i32_1 = arith.constant 0 : i32
    return %c0_i32, %c0_i32_0 : i32, i32
  }
  func.func @transform_5(%arg0: i32) -> (i32, i32) {
    %c0_i32 = arith.constant 0 : i32
    %c0_i32_0 = arith.constant 0 : i32
    %c0_i32_1 = arith.constant 0 : i32
    return %c0_i32, %c0_i32_0 : i32, i32
  }
  func.func @transform_6(%arg0: i32) -> (i32, i32) {
    %c0_i32 = arith.constant 0 : i32
    %c0_i32_0 = arith.constant 0 : i32
    %c0_i32_1 = arith.constant 0 : i32
    return %c0_i32, %c0_i32_0 : i32, i32
  }
  func.func @transform_7(%arg0: i32) -> (i32, i32) {
    %c0_i32 = arith.constant 0 : i32
    %c0_i32_0 = arith.constant 0 : i32
    return %arg0, %c0_i32 : i32, i32
  }
}

</mosaic_0001>

<bundles_post_ra>
// kernel: tpu_custom_call.1
= control target key start
LH: loop header
LB: loop body
LE: loop exit
PB: predicated region body
PF: predicated region fallthrough
CT: control target
= control target key end

     0   :  { %12 = vsyncpa [#allocation3], 0  ;;  %s860_s0 = inlined_call_operand.hbm [shape: f32[24,128], index: 0, kind: input, shape index: {}]   ;;  %s861_s1 = inlined_call_operand.vmem [shape: f32[1,128], index: 1, kind: input, shape index: {}]   ;;  %s862_s2 = inlined_call_operand.hbm [shape: f32[1,128], index: 2, kind: input, shape index: {}]   ;;  %s863_s3 = inlined_call_operand.hbm [shape: bf16[128,256], index: 3, kind: input, shape index: {}]   ;;  %s864_s4 = inlined_call_operand.vmem [shape: f32[1,256], index: 4, kind: input, shape index: {}]   ;;  %s865_s5 = inlined_call_operand.hbm [shape: bf16[256,128], index: 5, kind: input, shape index: {}]   ;;  %s866_s6 = inlined_call_operand.vmem [shape: f32[1,128], index: 6, kind: input, shape index: {}]   ;;  %s867_s7 = inlined_call_operand.hbm [shape: f32[24,128], index: 7, kind: output, shape index: {}]  }
   0x1   :  { %13 = vsyncpa [#allocation6], 0 }
   0x2   :  { %14 = vsyncpa [#allocation9], 0 }
   0x3   :  { %15 = vsyncpa [#allocation4], 0  ;;  %s777_s24 = smov [#allocation5]   ;;  %s778_s26 = smov [#allocation2]  }
   0x4   :  { %s36_s25 = sshll.u32 %s777_s24, 4  ;;  %s21_s27 = sshll.u32 %s778_s26, 4  ;;  %s37_s25 = int_to_ptr.vmem [resolvable:$true] %s36_s25  ;;  %s22_s27 = int_to_ptr.vmem [resolvable:$true] %s21_s27 }
   0x5   :  { %s677_s28 = scalar_lea.vmem %s37_s25, 16  ;;  %s681_s29 = scalar_lea.vmem %s37_s25, 32 }
   0x6   :  { %p678_p0 = scmp.ne.s32.totalorder %s37_s25, %s677_s28  ;;  %p682_p1 = scmp.lt.s32.totalorder %s37_s25, %s37_s25 }
   0x7   :  { %p683_p2 = scmp.lt.s32.totalorder %s681_s29, %s677_s28 }
   0x9   :  { %p684_p3 = por %p683_p2, %p682_p1 }
   0xb   :  { %p685_p4 = pnand %p684_p3, %p678_p0 }
   0xd   :  { %688 = shalt.err (!%p685_p4)
}
   0xe   :  { %39 = dma.hbm_to_vmem [thread:$0]  %s862_s2, 16, %s37_s25, [#allocation6]  }
   0xf   :  { %s697_s9 = scalar_lea.vmem %s22_s27, 384  ;;  %p702_p6 = scmp.lt.s32.totalorder %s22_s27, %s22_s27 }
  0x10   :  { %p698_p5 = scmp.ne.s32.totalorder %s22_s27, %s697_s9  ;;  %p703_p7 = scmp.lt.s32.totalorder %s697_s9, %s697_s9 }
  0x12   :  { %p704_p8 = por %p703_p7, %p702_p6 }
  0x14   :  { %p705_p9 = pnand %p704_p8, %p698_p5 }
  0x16   :  { %708 = shalt.err (!%p705_p9)
}
  0x17   :  { %s779_s10 = smov 128   ;;  %s780_s11 = smov 8  }
  0x18   :  { %27 = dma.hbm_to_vmem [thread:$0]  %s860_s0, 384, %s22_s27, [#allocation3], %s779_s10, %s779_s10, %s780_s11  }
  0x19   :  { %s781_s14 = smov [#allocation7]   ;;  %s782_s16 = smov [#allocation8]  }
  0x1a   :  { %s45_s15 = sshll.u32 %s781_s14, 4  ;;  %s59_s2 = sshll.u32 %s782_s16, 4  ;;  %s46_s15 = int_to_ptr.vmem [resolvable:$true] %s45_s15  ;;  %s60_s2 = int_to_ptr.vmem [resolvable:$true] %s59_s2 }
  0x1b   :  { %s717_s17 = scalar_lea.vmem %s46_s15, 2048  ;;  %p722_p11 = scmp.lt.s32.totalorder %s46_s15, %s46_s15 }
  0x1c   :  { %p718_p10 = scmp.ne.s32.totalorder %s46_s15, %s717_s17  ;;  %p723_p12 = scmp.lt.s32.totalorder %s717_s17, %s717_s17 }
  0x1e   :  { %p724_p13 = por %p723_p12, %p722_p11 }
  0x20   :  { %p725_p0 = pnand %p724_p13, %p718_p10 }
  0x22   :  { %728 = shalt.err (!%p725_p0)
}
  0x23   :  { %51 = dma.hbm_to_vmem [thread:$0]  %s863_s3, 2048, %s46_s15, [#allocation6], %s779_s10, %s779_s10, %s780_s11  }
  0x24   :  { %s737_s0 = scalar_lea.vmem %s60_s2, 2048  ;;  %p742_p2 = scmp.lt.s32.totalorder %s60_s2, %s60_s2 }
  0x25   :  { %p738_p1 = scmp.ne.s32.totalorder %s60_s2, %s737_s0  ;;  %p743_p3 = scmp.lt.s32.totalorder %s737_s0, %s737_s0 }
  0x27   :  { %p744_p4 = por %p743_p3, %p742_p2 }
  0x29   :  { %p745_p5 = pnand %p744_p4, %p738_p1 }
  0x2b   :  { %748 = shalt.err (!%p745_p5)
}
  0x2c   :  { %s783_s20 = smov 64   ;;  %s784_s21 = smov 4  }
  0x2d   :  { %65 = dma.hbm_to_vmem [thread:$0]  %s865_s5, 2048, %s60_s2, [#allocation9], %s783_s20, %s783_s20, %s784_s21  }
  0x2e   :  { %769 = dma.done.wait [#allocation3], 384  }
  0x2f   :  { %770 = vsyncadd [#allocation3], 4294966912 }
  0x30   :  { %771 = dma.done.wait [#allocation6], 2064  }
  0x31   :  { %772 = vsyncadd [#allocation6], 4294965232 }
  0x32   :  { %773 = dma.done.wait [#allocation9], 2048  }
  0x33   :  { %774 = vsyncadd [#allocation9], 4294965248  ;;  %v81_v0 = vld [vmem:[#allocation2] sm:$0xff]  ;;  %v83_v1 = vld [vmem:[#allocation2 + $0x10] sm:$0xff]  ;;  %v785_v26 = vmov 0   ;;  %s786_s26 = smov [#allocation10]  }
  0x34   :  { %v82_v2 = vld [vmem:[#allocation2 + $0x8] sm:$0xff]  ;;  %86 = vadd.xlane.f32.xlu0 %v81_v0  ;;  %90 = vadd.xlane.f32.xlu1 %v83_v1  ;;  %v616_v18 = vld [vmem:[#allocation7 + $0x60] ss:$8 sps:$4 sm:$0xff]   ;;  %v538_v43 = vld [vmem:[%s861_s1] ss:$0 sm:$0xff]  ;;  %s524_s27 = sshll.u32 %s786_s26, 4  ;;  %s525_s27 = int_to_ptr.vmem [resolvable:$true] %s524_s27 }
  0x35   :  { %v611_v3 = vld [vmem:[#allocation7 + $0x74] ss:$8 sps:$4 sm:$0xff]   ;;  %v613_v4 = vld [vmem:[#allocation7 + $0x70] ss:$8 sps:$4 sm:$0xff]   ;;  %v614_v17 = vld [vmem:[#allocation7 + $0x64] ss:$8 sps:$4 sm:$0xff]   ;;  %280 = vmatprep.mubr.bf16.mxu0 %v785_v26  ;;  %p754_p7 = scmp.lt.s32.totalorder %s525_s27, %s525_s27 }
  0x36   :  { %248 = vmatprep.subr.bf16.mxu0 %v611_v3  ;;  %v617_v19 = vld [vmem:[#allocation7 + $0x54] ss:$8 sps:$4 sm:$0xff]   ;;  %v619_v20 = vld [vmem:[#allocation7 + $0x50] ss:$8 sps:$4 sm:$0xff]   ;;  %v620_v21 = vld [vmem:[#allocation7 + $0x44] ss:$8 sps:$4 sm:$0xff]  }
  0x37   :  { %249 = vmatpush1.bf16.msra.mxu0 %v613_v4  ;;  %v622_v22 = vld [vmem:[#allocation7 + $0x40] ss:$8 sps:$4 sm:$0xff]   ;;  %v623_v23 = vld [vmem:[#allocation7 + $0x34] ss:$8 sps:$4 sm:$0xff]   ;;  %v625_v24 = vld [vmem:[#allocation7 + $0x30] ss:$8 sps:$4 sm:$0xff]  }
  0x38   :  { %88 = vadd.xlane.f32.xlu0 %v82_v2  ;;  %250 = vmatprep.subr.bf16.mxu0 %v614_v17  ;;  %v626_v25 = vld [vmem:[#allocation7 + $0x24] ss:$8 sps:$4 sm:$0xff]   ;;  %v628_v27 = vld [vmem:[#allocation7 + $0x20] ss:$8 sps:$4 sm:$0xff]   ;;  %v629_v28 = vld [vmem:[#allocation7 + $0x14] ss:$8 sps:$4 sm:$0xff]  }
  0x39   :  { %v631_v29 = vld [vmem:[#allocation7 + $0x10] ss:$8 sps:$4 sm:$0xff]   ;;  %v632_v30 = vld [vmem:[#allocation7 + $0x4] ss:$8 sps:$4 sm:$0xff]   ;;  %v634_v31 = vld [vmem:[#allocation7] ss:$8 sps:$4 sm:$0xff]  }
  0x3a   :  { %v539_v48 = vld [vmem:[#allocation5] ss:$0 sm:$0xff]  ;;  %v637_v59 = vld [vmem:[#allocation8 + $0x70] sm:$0xff]   ;;  %v639_v61 = vld [vmem:[#allocation8 + $0x68] sm:$0xff]  }
  0x3b   :  { %251 = vmatpush1.bf16.msra.mxu0 %v616_v18  ;;  %v635_v57 = vld [vmem:[#allocation8 + $0x78] sm:$0xff]   ;;  %v638_v60 = vld [vmem:[#allocation8 + $0x30] sm:$0xff]   ;;  %v640_v62 = vld [vmem:[#allocation8 + $0x28] sm:$0xff]  }
  0x3c   :  { %252 = vmatprep.subr.bf16.mxu0 %v617_v19  ;;  %v636_v58 = vld [vmem:[#allocation8 + $0x38] sm:$0xff]   ;;  %573 = vmatprep.subr.bf16.mxu1 %v635_v57  ;;  %v641_v63 = vld [vmem:[#allocation8 + $0x60] sm:$0xff]   ;;  %v645_v3 = vld [vmem:[#allocation8 + $0x50] sm:$0xff]  }
  0x3d   :  { %574 = vmatpush3.bf16.msra.mxu1 %v636_v58  ;;  %v646_v4 = vld [vmem:[#allocation8 + $0x10] sm:$0xff]  }
  0x3e   :  { %575 = vmatprep.subr.bf16.mxu1 %v637_v59 }
  0x3f   :  { %253 = vmatpush1.bf16.msra.mxu0 %v619_v20 }
  0x40   :  { %254 = vmatprep.subr.bf16.mxu0 %v620_v21 }
  0x41   :  { %576 = vmatpush3.bf16.msra.mxu1 %v638_v60 }
  0x42   :  { %577 = vmatprep.subr.bf16.mxu1 %v639_v61 }
  0x43   :  { %255 = vmatpush1.bf16.msra.mxu0 %v622_v22 }
  0x44   :  { %256 = vmatprep.subr.bf16.mxu0 %v623_v23 }
  0x45   :  { %578 = vmatpush3.bf16.msra.mxu1 %v640_v62 }
  0x46   :  { %579 = vmatprep.subr.bf16.mxu1 %v641_v63 }
  0x47   :  { %257 = vmatpush1.bf16.msra.mxu0 %v625_v24 }
  0x48   :  { %258 = vmatprep.subr.bf16.mxu0 %v626_v25 }
  0x4b   :  { %259 = vmatpush1.bf16.msra.mxu0 %v628_v27 }
  0x4c   :  { %260 = vmatprep.subr.bf16.mxu0 %v629_v28 }
  0x4f   :  { %261 = vmatpush1.bf16.msra.mxu0 %v631_v29 }
  0x50   :  { %262 = vmatprep.subr.bf16.mxu0 %v632_v30 }
  0x53   :  { %263 = vmatpush1.bf16.msra.mxu0 %v634_v31 }
  0xbd   :  { %v87_v5 = vpop.xlane.xlu0 %86  ;;  %v91_v6 = vpop.xlane.xlu1 %90 }
  0xbe   :  { %v93_v7 = vmul.f32 0.0078125, %v87_v5  ;;  %v95_v8 = vmul.f32 0.0078125, %v91_v6  ;;  %v647_v5 = vld [vmem:[#allocation8 + $0x48] sm:$0xff]  }
  0xbf   :  { %v648_v6 = vld [vmem:[#allocation8 + $0x8] sm:$0xff]  }
  0xc0   :  { %v96_v9 = vsub.f32 %v81_v0, %v93_v7  ;;  %v98_v10 = vsub.f32 %v83_v1, %v95_v8  ;;  %v642_v0 = vld [vmem:[#allocation8 + $0x20] sm:$0xff]   ;;  %v643_v1 = vld [vmem:[#allocation8 + $0x58] sm:$0xff]  }
  0xc1   :  { %v89_v11 = vpop.xlane.xlu0 %88  ;;  %580 = vmatpush3.bf16.msra.mxu1 %v642_v0  ;;  %v649_v7 = vld [vmem:[#allocation8 + $0x40] sm:$0xff]  }
  0xc2   :  { %v94_v12 = vmul.f32 0.0078125, %v89_v11  ;;  %v99_v13 = vmul.f32 %v96_v9, %v96_v9  ;;  %v101_v15 = vmul.f32 %v98_v10, %v98_v10  ;;  %581 = vmatprep.subr.bf16.mxu1 %v643_v1  ;;  %v650_v8 = vld [vmem:[#allocation8] sm:$0xff]  }
  0xc3   :  { %v556_v1 = vld [vmem:[%s866_s6] ss:$0 sm:$0xff]  ;;  %s749_s6 = scalar_lea.vmem %s525_s27, 384 }
  0xc4   :  { %v97_v14 = vsub.f32 %v82_v2, %v94_v12  ;;  %102 = vadd.xlane.f32.xlu1 %v99_v13  ;;  %v644_v2 = vld [vmem:[#allocation8 + $0x18] sm:$0xff]   ;;  %v156_v12 = vld [vmem:[%s864_s4] sm:$0x3]  ;;  %p750_p6 = scmp.ne.s32.totalorder %s525_s27, %s749_s6  ;;  %p755_p8 = scmp.lt.s32.totalorder %s749_s6, %s749_s6 }
  0xc5   :  { %582 = vmatpush3.bf16.msra.mxu1 %v644_v2 }
  0xc6   :  { %v100_v16 = vmul.f32 %v97_v14, %v97_v14  ;;  %583 = vmatprep.subr.bf16.mxu1 %v645_v3  ;;  %p756_p9 = por %p755_p8, %p754_p7 }
  0xc8   :  { %106 = vadd.xlane.f32.xlu1 %v101_v15  ;;  %104 = vadd.xlane.f32.xlu0 %v100_v16  ;;  %p757_p10 = pnand %p756_p9, %p750_p6 }
  0xc9   :  { %584 = vmatpush3.bf16.msra.mxu1 %v646_v4 }
  0xca   :  { %585 = vmatprep.subr.bf16.mxu1 %v647_v5 }
  0xcd   :  { %586 = vmatpush3.bf16.msra.mxu1 %v648_v6 }
  0xce   :  { %587 = vmatprep.subr.bf16.mxu1 %v649_v7 }
  0xd1   :  { %588 = vmatpush3.bf16.msra.mxu1 %v650_v8 }
 0x14d   :  { %v103_v32 = vpop.xlane.xlu1 %102 }
 0x14e   :  { %v108_v33 = vmul.f32 0.0078125, %v103_v32 }
 0x150   :  { %v111_v34 = vadd.f32 1e-05, %v108_v33 }
 0x151   :  { %v107_v35 = vpop.xlane.xlu1 %106  ;;  %v105_v36 = vpop.xlane.xlu0 %104 }
 0x152   :  { %651 = vrsqrt.f32 %v111_v34  ;;  %v110_v37 = vmul.f32 0.0078125, %v107_v35  ;;  %v109_v38 = vmul.f32 0.0078125, %v105_v36 }
 0x154   :  { %v113_v39 = vadd.f32 1e-05, %v110_v37  ;;  %v112_v40 = vadd.f32 1e-05, %v109_v38 }
 0x156   :  { %653 = vrsqrt.f32 %v113_v39 }
 0x157   :  { %655 = vrsqrt.f32 %v112_v40 }
 0x15f   :  { %v652_v41 = vpop.eup %651 }
 0x160   :  { %v117_v42 = vmul.f32 %v652_v41, %v96_v9  ;;  %v158_v9 = vlaneseq }
 0x162   :  { %v126_v47 = vmul.f32 %v538_v43, %v117_v42 }
 0x163   :  { %v654_v44 = vpop.eup %653 }
 0x164   :  { %v656_v45 = vpop.eup %655  ;;  %v119_v50 = vmul.f32 %v654_v44, %v98_v10  ;;  %v135_v51 = vadd.f32 %v539_v48, %v126_v47  ;;  %v159_v10 = vshrl.u32 %v158_v9, 7 }
 0x165   :  { %v118_v46 = vmul.f32 %v656_v45, %v97_v14 }
 0x166   :  { %v128_v54 = vmul.f32 %v538_v43, %v119_v50  ;;  %v160_v11 = vsub.s32 0, %v159_v10  ;;  %v164_v13 = vsub.s32 1, %v159_v10 }
 0x167   :  { %v127_v49 = vmul.f32 %v538_v43, %v118_v46 }
 0x168   :  { %v137_v55 = vadd.f32 %v539_v48, %v128_v54  ;;  %v161_v14 = vrot.slane %v156_v12, %v160_v11  ;;  %v165_v15 = vrot.slane %v156_v12, %v164_v13 }
 0x169   :  { %v136_v52 = vadd.f32 %v539_v48, %v127_v49 }
 0x16a   :  { %v139_v56 = vpack.c.bf16 %v137_v55, %v137_v55 }
 0x16b   :  { %v138_v53 = vpack.c.bf16 %v136_v52, %v135_v51 }
 0x16d   :  { %281 = vmatmul.mubr.bf16.vlgmr.msra.gmra.mxu0 %v138_v53 }
 0x16e   :  { %290 = vmatprep.mubr.bf16.mxu0 %v785_v26 }
 0x175   :  { %291 = vmatmul.mubr.bf16.gmra.mxu0 %v139_v56 }
 0x22d   :  { %v282_v16 = vpop.f32.mrf.mxu0 }
 0x22e   :  { %v283_v17 = vadd.f32 %v282_v16, %v161_v14 }
 0x22f   :  { %v284_v18 = vpop.f32.mrf.mxu0 }
 0x230   :  { %v285_v19 = vadd.f32 %v284_v18, %v165_v15  ;;  %v305_v20 = vmul.f32 0.70710677, %v283_v17  ;;  %v299_v47 = vmul.f32 0.5, %v283_v17 }
 0x231   :  { %v286_v21 = vpop.f32.mrf.mxu0 }
 0x232   :  { %v306_v22 = vmul.f32 0.70710677, %v285_v19  ;;  %v287_v23 = vadd.f32 %v286_v21, %v161_v14  ;;  %v300_v44 = vmul.f32 0.5, %v285_v19 }
 0x233   :  { %v288_v24 = vpop.f32.mrf.mxu0 }
 0x234   :  { %657 = verf.f32 %v306_v22  ;;  %v307_v25 = vmul.f32 0.70710677, %v287_v23  ;;  %v289_v26 = vadd.f32 %v288_v24, %v165_v15  ;;  %v301_v43 = vmul.f32 0.5, %v287_v23 }
 0x235   :  { %659 = verf.f32 %v305_v20  ;;  %v292_v27 = vpop.f32.mrf.mxu0 }
 0x236   :  { %661 = verf.f32 %v307_v25  ;;  %v308_v28 = vmul.f32 0.70710677, %v289_v26  ;;  %v293_v29 = vadd.f32 %v292_v27, %v161_v14  ;;  %v302_v45 = vmul.f32 0.5, %v289_v26 }
 0x237   :  { %v294_v30 = vpop.f32.mrf.mxu0 }
 0x238   :  { %663 = verf.f32 %v308_v28  ;;  %v309_v31 = vmul.f32 0.70710677, %v293_v29  ;;  %v295_v32 = vadd.f32 %v294_v30, %v165_v15  ;;  %v303_v60 = vmul.f32 0.5, %v293_v29 }
 0x239   :  { %v296_v33 = vpop.f32.mrf.mxu0 }
 0x23a   :  { %v310_v34 = vmul.f32 0.70710677, %v295_v32  ;;  %665 = verf.f32 %v309_v31  ;;  %v304_v54 = vmul.f32 0.5, %v295_v32 }
 0x23b   :  { %v297_v35 = vpop.f32.mrf.mxu0 }
 0x23c   :  { %667 = verf.f32 %v310_v34 }
 0x241   :  { %v658_v36 = vpop.eup %657 }
 0x242   :  { %v660_v37 = vpop.eup %659  ;;  %v318_v40 = vadd.f32 1.0, %v658_v36 }
 0x243   :  { %v662_v38 = vpop.eup %661  ;;  %v317_v42 = vadd.f32 1.0, %v660_v37 }
 0x244   :  { %v319_v39 = vadd.f32 1.0, %v662_v38  ;;  %v324_v50 = vmul.f32 %v318_v40, %v300_v44 }
 0x245   :  { %v664_v41 = vpop.eup %663  ;;  %v323_v53 = vmul.f32 %v317_v42, %v299_v47 }
 0x246   :  { %v320_v46 = vadd.f32 1.0, %v664_v41  ;;  %v325_v48 = vmul.f32 %v319_v39, %v301_v43 }
 0x247   :  { %v666_v49 = vpop.eup %665 }
 0x248   :  { %v326_v51 = vmul.f32 %v320_v46, %v302_v45  ;;  %v329_v57 = vpack.c.bf16 %v325_v48, %v323_v53  ;;  %v321_v58 = vadd.f32 1.0, %v666_v49 }
 0x249   :  { %v668_v52 = vpop.eup %667 }
 0x24a   :  { %v330_v55 = vpack.c.bf16 %v326_v51, %v324_v50  ;;  %v322_v56 = vadd.f32 1.0, %v668_v52  ;;  %v327_v62 = vmul.f32 %v321_v58, %v303_v60 }
 0x24c   :  { %500 = vmatprep.mubr.bf16.mxu1 %v330_v55  ;;  %v328_v59 = vmul.f32 %v322_v56, %v304_v54  ;;  %v331_v63 = vpack.c.bf16 %v327_v62, %v327_v62 }
 0x24d   :  { %501 = vmatmul.mubr.bf16.vlgmr.msra.gmra.mxu1 %v329_v57 }
 0x24e   :  { %v332_v61 = vpack.c.bf16 %v328_v59, %v328_v59 }
 0x250   :  { %508 = vmatprep.mubr.bf16.mxu1 %v332_v61 }
 0x255   :  { %509 = vmatmul.mubr.bf16.gmra.mxu1 %v331_v63 }
 0x30d   :  { %v589_v0 = vpop.f32.mrf.mxu1 }
 0x30f   :  { %v590_v2 = vpop.f32.mrf.mxu1 }
 0x310   :  { %v591_v3 = vadd.f32 %v590_v2, %v589_v0 }
 0x311   :  { %v592_v4 = vpop.f32.mrf.mxu1 }
 0x312   :  { %v503_v5 = vadd.f32 %v591_v3, %v556_v1 }
 0x313   :  { %v593_v6 = vpop.f32.mrf.mxu1 }
 0x314   :  { %516 = vst [vmem:[#allocation10] sm:$0xff] %v503_v5  ;;  %v594_v7 = vadd.f32 %v593_v6, %v592_v4 }
 0x315   :  { %v595_v8 = vpop.f32.mrf.mxu1 }
 0x316   :  { %v506_v9 = vadd.f32 %v594_v7, %v556_v1 }
 0x317   :  { %v596_v10 = vpop.f32.mrf.mxu1 }
 0x318   :  { %517 = vst [vmem:[#allocation10 + $0x8] sm:$0xff] %v506_v9  ;;  %v597_v11 = vadd.f32 %v596_v10, %v595_v8 }
 0x319   :  { %v598_v12 = vpop.f32.mrf.mxu1 }
 0x31a   :  { %v511_v13 = vadd.f32 %v597_v11, %v556_v1 }
 0x31b   :  { %v599_v14 = vpop.f32.mrf.mxu1 }
 0x31c   :  { %518 = vst [vmem:[#allocation10 + $0x10] sm:$0xff] %v511_v13 }
 0x31d   :  { %760 = shalt.err (!%p757_p10)
}
 0x31e   :  { %530 = dma.vmem_to_hbm [thread:$0]  %s525_s27, 384, %s867_s7, [#allocation4], %s779_s10, %s779_s10, %s780_s11  }
 0x31f   :  { %775 = dma.done.wait [#allocation4], 384  }
 0x320   :  { %776 = vsyncadd [#allocation4], 4294966912 }
 0x321   :  { %534 = vsyncpa [#allocation3], 1 }
 0x322   :  { %535 = vsyncpa [#allocation6], 1 }
 0x323   :  { %536 = vsyncpa [#allocation9], 1 }
 0x324   :  { %537 = vsyncpa [#allocation4], 1 }

</bundles_post_ra>
